<compile_context>
chip_gen: v6e
topology: v6e:2x2x1
jax: 0.10.0
libtpu: 0.0.40
codegen_flags: <defaults>
</compile_context>

<pallas_src>
import functools

import jax
import jax.numpy as jnp
from jax.experimental import pallas as pl
from jax.experimental.pallas import tpu as pltpu

_BN_EPS = 1e-5


# ---------------------------------------------------------------------------
# Kernel
# ---------------------------------------------------------------------------
def _mlp_kernel(x_ref, w1_ref, g_ref, b_ref, w2_ref, b2_ref, o_ref,
                *, n_sub, sub_w):
    ht = pl.program_id(1)                       # hidden (contraction) axis
    x = x_ref[...]                              # bf16 [B, dim], resident
    inv_b = 1.0 / x_ref.shape[0]                # static

    partial = None
    # Static unroll over lane-aligned sub-tiles: independent MXU->VPU chains
    # so the LLO scheduler can co-issue sub-tile s+1's vmatmul pushes with
    # sub-tile s's BN/ReLU VALU/EUP work.
    for s in range(n_sub):
        lo = s * sub_w
        hi = lo + sub_w

        # ----- Linear 1 (hidden sub-tile):  h = x @ W1[:, sub]  (bf16 MXU, f32 acc)
        # b1 omitted: exactly cancelled by the BN batch-mean subtraction.
        h = jnp.dot(x, w1_ref[:, lo:hi], preferred_element_type=jnp.float32)

        # ----- BatchNorm1d (training mode, biased variance), single-pass fold
        mean = jnp.sum(h, axis=0, keepdims=True) * inv_b            # [1, sub_w]
        msq = jnp.sum(h * h, axis=0, keepdims=True) * inv_b
        var = jnp.maximum(msq - mean * mean, 0.0)                   # f32, clamped
        scale = g_ref[:, lo:hi] * jax.lax.rsqrt(var + _BN_EPS)      # rsqrt -> EUP
        shift = b_ref[:, lo:hi] - mean * scale

        # ----- ReLU, cast to bf16 for the second MXU pass
        h_act = jnp.maximum(h * scale + shift, 0.0).astype(jnp.bfloat16)

        # ----- Linear 2 partial product for this hidden sub-tile
        p = jnp.dot(h_act, w2_ref[lo:hi, :], preferred_element_type=jnp.float32)
        partial = p if partial is None else partial + p

    # Accumulate directly into the resident f32 output (no separate scratch);
    # fold the b2 add into the init step.
    @pl.when(ht == 0)
    def _():
        o_ref[...] = partial + b2_ref[...]

    @pl.when(ht != 0)
    def _():
        o_ref[...] += partial


# ---------------------------------------------------------------------------
# Wrapper helpers
# ---------------------------------------------------------------------------
def prepare_mlp_params(w1, gamma, beta, w2, b2):
    """One-time weight cast/pad (hoist out of per-step calls)."""
    dim, hidden = w1.shape
    proj = w2.shape[1]
    p_pad = max(128, ((proj + 127) // 128) * 128)   # lane-dense output width
    return dict(
        w1=w1.astype(jnp.bfloat16),
        gamma=jnp.reshape(gamma, (1, hidden)).astype(jnp.float32),
        beta=jnp.reshape(beta, (1, hidden)).astype(jnp.float32),
        w2=jnp.pad(w2, ((0, 0), (0, p_pad - proj))).astype(jnp.bfloat16),
        b2=jnp.pad(jnp.reshape(b2, (1, proj)),
                   ((0, 0), (0, p_pad - proj))).astype(jnp.float32),
        dim=dim, hidden=hidden, proj=proj, p_pad=p_pad,
    )


def _vmem_budget_bytes():
    """Generation-aware safe VMEM request (leaves headroom for compiler scratch)."""
    cap = 64 << 20                                  # conservative fallback
    try:
        info = pltpu.get_tpu_info()
        cap = int(getattr(info, "vmem_capacity_bytes", cap) or cap)
    except Exception:
        pass
    # v7x (64 MiB/TC) -> ~38 MiB; v5e/v6e (128 MiB) -> ~77 MiB (capped at 80).
    return min(int(cap * 0.6), 80 << 20)


def _vmem_estimate(B, dim, th, tp):
    # Resident (constant index maps): x (bf16), b2 (f32), out accumulator (f32).
    resident = B * dim * 2 + tp * 4 + B * tp * 4
    # Double-buffered per-tile streams: W1, W2 (bf16), gamma, beta (f32).
    per_tile = dim * th * 2 + th * tp * 2 + 2 * th * 4
    return resident + 2 * per_tile


def mlp_pallas(x, params, *, hidden_tile=None, proj_tile=None):
    """x: [B, dim] f32. params: output of prepare_mlp_params. Returns [B, proj] f32."""
    B, dim = x.shape
    hidden, proj, p_pad = params["hidden"], params["proj"], params["p_pad"]
    assert params["dim"] == dim, (params["dim"], dim)

    budget = _vmem_budget_bytes()

    # Projection-axis split: only worth it when matmul2 dominates matmul1 and
    # there is a second TensorCore to feed (64 MiB VMEM cap ~ v7x signal).
    if proj_tile is None:
        if p_pad >= 256 and p_pad >= 2 * dim and budget <= (40 << 20):
            proj_tile = p_pad // 2
        else:
            proj_tile = p_pad
    tp = proj_tile
    assert p_pad % tp == 0 and (tp == p_pad or tp % 128 == 0), (p_pad, tp)
    n_proj = p_pad // tp

    # Hidden tile: largest candidate that fits the VMEM budget. Whole axis
    # first (grid of 1 -> no per-step overhead), then 256-aligned tiles
    # (fills the 2x256x256 MXU on v6e/v7x), 128 as the v5e-friendly floor.
    if hidden_tile is None:
        cands = [hidden] + [t for t in (2048, 1024, 512, 256, 128)
                            if t < hidden and hidden % t == 0]
        hidden_tile = next((t for t in cands
                            if _vmem_estimate(B, dim, t, tp) <= budget),
                           cands[-1])
    th = hidden_tile
    assert hidden % th == 0, (hidden, th)
    n_hid = hidden // th

    # 2-way in-body unroll when the tile splits into two lane-aligned halves.
    n_sub = 2 if (th % 256 == 0) else 1
    sub_w = th // n_sub

    est = _vmem_estimate(B, dim, th, tp)
    vmem_limit = int(min(max(int(est * 1.25) + (2 << 20), 8 << 20), budget))

    grid_spec = pltpu.PrefetchScalarGridSpec(
        num_scalar_prefetch=0,
        grid=(n_proj, n_hid),                               # contraction axis last
        in_specs=[
            pl.BlockSpec((B, dim), lambda p, h: (0, 0)),    # x: resident
            pl.BlockSpec((dim, th), lambda p, h: (0, h)),   # W1 hidden tile
            pl.BlockSpec((1, th), lambda p, h: (0, h)),     # gamma tile
            pl.BlockSpec((1, th), lambda p, h: (0, h)),     # beta tile
            pl.BlockSpec((th, tp), lambda p, h: (h, p)),    # W2 tile
            pl.BlockSpec((1, tp), lambda p, h: (0, p)),     # b2 proj tile
        ],
        out_specs=pl.BlockSpec((B, tp), lambda p, h: (0, p)),  # resident accumulator
    )
    # TODO(synk): if profiling shows exposed W1/W2 DMA at small B, add
    # pipeline_mode=pl.Buffered(3) on the W1/W2 specs (VMEM headroom permitting).

    kernel = functools.partial(_mlp_kernel, n_sub=n_sub, sub_w=sub_w)
    out = pl.pallas_call(
        kernel,
        out_shape=jax.ShapeDtypeStruct((B, p_pad), jnp.float32),
        grid_spec=grid_spec,
        compiler_params=pltpu.CompilerParams(
            dimension_semantics=("parallel", "arbitrary"),
            vmem_limit_bytes=vmem_limit,
        ),
    )(x.astype(jnp.bfloat16), params["w1"], params["gamma"], params["beta"],
      params["w2"], params["b2"])
    return out[:, :proj]


def mlp_forward(x, w1, gamma, beta, w2, b2, **kw):
    """Convenience: prepare (cast/pad) weights and run the kernel."""
    return mlp_pallas(x, prepare_mlp_params(w1, gamma, beta, w2, b2), **kw)


# ---------------------------------------------------------------------------
# Pure-JAX references
# ---------------------------------------------------------------------------
def mlp_ref_f32(x, w1, b1, gamma, beta, w2, b2):
    """Faithful f32 PyTorch training-mode forward."""
    h = x @ w1 + b1
    mean = jnp.mean(h, axis=0, keepdims=True)
    var = jnp.mean((h - mean) ** 2, axis=0, keepdims=True)
    h = (h - mean) / jnp.sqrt(var + _BN_EPS)
    h = h * gamma + beta
    h = jnp.maximum(h, 0.0)
    return h @ w2 + b2


def mlp_ref_bf16(x, w1, b1, gamma, beta, w2, b2):
    """Precision-matched reference: bf16 MXU inputs, f32 accumulation/BN."""
    h = jnp.dot(x.astype(jnp.bfloat16), w1.astype(jnp.bfloat16),
                preferred_element_type=jnp.float32) + b1
    mean = jnp.mean(h, axis=0, keepdims=True)
    var = jnp.mean((h - mean) ** 2, axis=0, keepdims=True)
    h = (h - mean) / jnp.sqrt(var + _BN_EPS)
    h = h * gamma + beta
    h = jnp.maximum(h, 0.0).astype(jnp.bfloat16)
    return jnp.dot(h, w2.astype(jnp.bfloat16),
                   preferred_element_type=jnp.float32) + b2


if __name__ == "__main__":
    # Small shapes consistent with MLP(dim, projection_size, hidden_size).
    # hidden=256 -> default tile is the whole axis (grid of 1) with the 2-way
    # in-body sub-tile unroll exercised (sub_w=128).
    B, dim, hidden, proj = 8, 32, 256, 16

    key = jax.random.PRNGKey(0)
    kx, kw1, kb1, kw2, kb2 = jax.random.split(key, 5)

    x = jax.random.normal(kx, (B, dim), jnp.float32)

    # Deterministic synthetic params (PyTorch-style fan-in scaling).
    w1 = jax.random.uniform(kw1, (dim, hidden), jnp.float32,
                            minval=-1.0, maxval=1.0) / jnp.sqrt(dim)
    b1 = jax.random.uniform(kb1, (1, hidden), jnp.float32,
                            minval=-1.0, maxval=1.0) / jnp.sqrt(dim)
    gamma = jnp.ones((1, hidden), jnp.float32)   # BatchNorm1d init: weight=1
    beta = jnp.zeros((1, hidden), jnp.float32)   # BatchNorm1d init: bias=0
    w2 = jax.random.uniform(kw2, (hidden, proj), jnp.float32,
                            minval=-1.0, maxval=1.0) / jnp.sqrt(hidden)
    b2 = jax.random.uniform(kb2, (1, proj), jnp.float32,
                            minval=-1.0, maxval=1.0) / jnp.sqrt(hidden)

    params = prepare_mlp_params(w1, gamma, beta, w2, b2)   # one-time cast/pad
    out = mlp_pallas(x, params)
    jax.block_until_ready(out)
    assert out.shape == (B, proj), out.shape

    # Tight check against a precision-matched (bf16-MXU) reference.
    ref_bf = mlp_ref_bf16(x, w1, b1, gamma, beta, w2, b2)
    err_bf = float(jnp.max(jnp.abs(out - ref_bf)))
    assert jnp.allclose(out, ref_bf, atol=5e-3, rtol=5e-3), err_bf

    # Loose check against the faithful f32 PyTorch semantics (bf16 rounding).
    ref32 = mlp_ref_f32(x, w1, b1, gamma, beta, w2, b2)
    err32 = float(jnp.max(jnp.abs(out - ref32)))
    assert jnp.allclose(out, ref32, atol=3e-2, rtol=3e-2), err32

    print("KERNEL_OK")
</pallas_src>

<mosaic_0001>
module attributes {stable_mosaic.version = 11 : i64} {
  func.func @_mlp_kernel(%arg0: i32, %arg1: i32, %arg2: memref<8x32xbf16, #tpu.memory_space<vmem>>, %arg3: memref<32x256xbf16, #tpu.memory_space<vmem>>, %arg4: memref<1x256xf32, #tpu.memory_space<vmem>>, %arg5: memref<1x256xf32, #tpu.memory_space<vmem>>, %arg6: memref<256x128xbf16, #tpu.memory_space<vmem>>, %arg7: memref<1x128xf32, #tpu.memory_space<vmem>>, %arg8: memref<8x128xf32, #tpu.memory_space<vmem>>) attributes {dimension_semantics = [#tpu.dimension_semantics<parallel>, #tpu.dimension_semantics<arbitrary>], iteration_bounds = array<i64: 1, 1>, scalar_prefetch = 0 : i64, scratch_operands = 0 : i64, tpu.core_type = #tpu.core_type<tc>, window_params = [{pipeline_mode = #tpu.pipeline_mode<synchronous>, transform_indices = @transform_0, window_bounds = array<i64: 8, 32>}, {transform_indices = @transform_1, window_bounds = array<i64: 32, 256>}, {transform_indices = @transform_2, window_bounds = array<i64: 1, 256>}, {transform_indices = @transform_3, window_bounds = array<i64: 1, 256>}, {transform_indices = @transform_4, window_bounds = array<i64: 256, 128>}, {transform_indices = @transform_5, window_bounds = array<i64: 1, 128>}, {transform_indices = @transform_6, window_bounds = array<i64: 8, 128>}]} {
    %c0 = arith.constant 0 : index
    %c0_0 = arith.constant 0 : index
    %0 = vector.load %arg2[%c0, %c0_0] : memref<8x32xbf16, #tpu.memory_space<vmem>>, vector<8x32xbf16>
    %c0_1 = arith.constant 0 : index
    %c0_2 = arith.constant 0 : index
    %1 = vector.load %arg3[%c0_1, %c0_2] : memref<32x256xbf16, #tpu.memory_space<vmem>>, vector<32x128xbf16>
    %cst = arith.constant dense<0.000000e+00> : vector<8x128xf32>
    %2 = tpu.matmul %0, %1, %cst {dimension_numbers = #tpu.dot_dimension_numbers<[1], [0], [0], [1], [0, 0, 1, 1], [], []>} : vector<8x32xbf16>, vector<32x128xbf16>, vector<8x128xf32> -> vector<8x128xf32>
    %cst_3 = arith.constant dense<0.000000e+00> : vector<128xf32>
    %3 = vector.multi_reduction <add>, %2, %cst_3 [0] : vector<8x128xf32> to vector<128xf32>
    %4 = vector.shape_cast %3 : vector<128xf32> to vector<1x128xf32>
    %cst_4 = arith.constant 1.250000e-01 : f32
    %5 = vector.broadcast %cst_4 : f32 to vector<1x128xf32>
    %6 = arith.mulf %4, %5 : vector<1x128xf32>
    %7 = arith.mulf %2, %2 : vector<8x128xf32>
    %cst_5 = arith.constant dense<0.000000e+00> : vector<128xf32>
    %8 = vector.multi_reduction <add>, %7, %cst_5 [0] : vector<8x128xf32> to vector<128xf32>
    %9 = vector.shape_cast %8 : vector<128xf32> to vector<1x128xf32>
    %cst_6 = arith.constant 1.250000e-01 : f32
    %10 = vector.broadcast %cst_6 : f32 to vector<1x128xf32>
    %11 = arith.mulf %9, %10 : vector<1x128xf32>
    %12 = arith.mulf %6, %6 : vector<1x128xf32>
    %13 = arith.subf %11, %12 : vector<1x128xf32>
    %cst_7 = arith.constant 0.000000e+00 : f32
    %14 = vector.broadcast %cst_7 : f32 to vector<1x128xf32>
    %15 = arith.maximumf %13, %14 : vector<1x128xf32>
    %c0_8 = arith.constant 0 : index
    %c0_9 = arith.constant 0 : index
    %16 = vector.load %arg4[%c0_8, %c0_9] : memref<1x256xf32, #tpu.memory_space<vmem>>, vector<1x128xf32>
    %cst_10 = arith.constant 9.99999974E-6 : f32
    %17 = vector.broadcast %cst_10 : f32 to vector<1x128xf32>
    %18 = arith.addf %15, %17 : vector<1x128xf32>
    %19 = math.rsqrt %18 : vector<1x128xf32>
    %20 = arith.mulf %16, %19 : vector<1x128xf32>
    %c0_11 = arith.constant 0 : index
    %c0_12 = arith.constant 0 : index
    %21 = vector.load %arg5[%c0_11, %c0_12] : memref<1x256xf32, #tpu.memory_space<vmem>>, vector<1x128xf32>
    %22 = arith.mulf %6, %20 : vector<1x128xf32>
    %23 = arith.subf %21, %22 : vector<1x128xf32>
    %24 = vector.broadcast %20 : vector<1x128xf32> to vector<8x128xf32>
    %25 = arith.mulf %2, %24 : vector<8x128xf32>
    %26 = vector.broadcast %23 : vector<1x128xf32> to vector<8x128xf32>
    %27 = arith.addf %25, %26 : vector<8x128xf32>
    %cst_13 = arith.constant 0.000000e+00 : f32
    %28 = vector.broadcast %cst_13 : f32 to vector<8x128xf32>
    %29 = arith.maximumf %27, %28 : vector<8x128xf32>
    %30 = arith.truncf %29 : vector<8x128xf32> to vector<8x128xbf16>
    %c0_14 = arith.constant 0 : index
    %c0_15 = arith.constant 0 : index
    %31 = vector.load %arg6[%c0_14, %c0_15] : memref<256x128xbf16, #tpu.memory_space<vmem>>, vector<128x128xbf16>
    %cst_16 = arith.constant dense<0.000000e+00> : vector<8x128xf32>
    %32 = tpu.matmul %30, %31, %cst_16 {dimension_numbers = #tpu.dot_dimension_numbers<[1], [0], [0], [1], [0, 0, 1, 1], [], []>} : vector<8x128xbf16>, vector<128x128xbf16>, vector<8x128xf32> -> vector<8x128xf32>
    %c0_17 = arith.constant 0 : index
    %c128 = arith.constant 128 : index
    %33 = vector.load %arg3[%c0_17, %c128] : memref<32x256xbf16, #tpu.memory_space<vmem>>, vector<32x128xbf16>
    %cst_18 = arith.constant dense<0.000000e+00> : vector<8x128xf32>
    %34 = tpu.matmul %0, %33, %cst_18 {dimension_numbers = #tpu.dot_dimension_numbers<[1], [0], [0], [1], [0, 0, 1, 1], [], []>} : vector<8x32xbf16>, vector<32x128xbf16>, vector<8x128xf32> -> vector<8x128xf32>
    %cst_19 = arith.constant dense<0.000000e+00> : vector<128xf32>
    %35 = vector.multi_reduction <add>, %34, %cst_19 [0] : vector<8x128xf32> to vector<128xf32>
    %36 = vector.shape_cast %35 : vector<128xf32> to vector<1x128xf32>
    %cst_20 = arith.constant 1.250000e-01 : f32
    %37 = vector.broadcast %cst_20 : f32 to vector<1x128xf32>
    %38 = arith.mulf %36, %37 : vector<1x128xf32>
    %39 = arith.mulf %34, %34 : vector<8x128xf32>
    %cst_21 = arith.constant dense<0.000000e+00> : vector<128xf32>
    %40 = vector.multi_reduction <add>, %39, %cst_21 [0] : vector<8x128xf32> to vector<128xf32>
    %41 = vector.shape_cast %40 : vector<128xf32> to vector<1x128xf32>
    %cst_22 = arith.constant 1.250000e-01 : f32
    %42 = vector.broadcast %cst_22 : f32 to vector<1x128xf32>
    %43 = arith.mulf %41, %42 : vector<1x128xf32>
    %44 = arith.mulf %38, %38 : vector<1x128xf32>
    %45 = arith.subf %43, %44 : vector<1x128xf32>
    %cst_23 = arith.constant 0.000000e+00 : f32
    %46 = vector.broadcast %cst_23 : f32 to vector<1x128xf32>
    %47 = arith.maximumf %45, %46 : vector<1x128xf32>
    %c0_24 = arith.constant 0 : index
    %c128_25 = arith.constant 128 : index
    %48 = vector.load %arg4[%c0_24, %c128_25] : memref<1x256xf32, #tpu.memory_space<vmem>>, vector<1x128xf32>
    %cst_26 = arith.constant 9.99999974E-6 : f32
    %49 = vector.broadcast %cst_26 : f32 to vector<1x128xf32>
    %50 = arith.addf %47, %49 : vector<1x128xf32>
    %51 = math.rsqrt %50 : vector<1x128xf32>
    %52 = arith.mulf %48, %51 : vector<1x128xf32>
    %c0_27 = arith.constant 0 : index
    %c128_28 = arith.constant 128 : index
    %53 = vector.load %arg5[%c0_27, %c128_28] : memref<1x256xf32, #tpu.memory_space<vmem>>, vector<1x128xf32>
    %54 = arith.mulf %38, %52 : vector<1x128xf32>
    %55 = arith.subf %53, %54 : vector<1x128xf32>
    %56 = vector.broadcast %52 : vector<1x128xf32> to vector<8x128xf32>
    %57 = arith.mulf %34, %56 : vector<8x128xf32>
    %58 = vector.broadcast %55 : vector<1x128xf32> to vector<8x128xf32>
    %59 = arith.addf %57, %58 : vector<8x128xf32>
    %cst_29 = arith.constant 0.000000e+00 : f32
    %60 = vector.broadcast %cst_29 : f32 to vector<8x128xf32>
    %61 = arith.maximumf %59, %60 : vector<8x128xf32>
    %62 = arith.truncf %61 : vector<8x128xf32> to vector<8x128xbf16>
    %c128_30 = arith.constant 128 : index
    %c0_31 = arith.constant 0 : index
    %63 = vector.load %arg6[%c128_30, %c0_31] : memref<256x128xbf16, #tpu.memory_space<vmem>>, vector<128x128xbf16>
    %cst_32 = arith.constant dense<0.000000e+00> : vector<8x128xf32>
    %64 = tpu.matmul %62, %63, %cst_32 {dimension_numbers = #tpu.dot_dimension_numbers<[1], [0], [0], [1], [0, 0, 1, 1], [], []>} : vector<8x128xbf16>, vector<128x128xbf16>, vector<8x128xf32> -> vector<8x128xf32>
    %65 = arith.addf %32, %64 : vector<8x128xf32>
    %c0_i32 = arith.constant 0 : i32
    %66 = arith.cmpi eq, %arg1, %c0_i32 : i32
    %67 = arith.extui %66 : i1 to i32
    %c0_i32_33 = arith.constant 0 : i32
    %68 = arith.cmpi ne, %67, %c0_i32_33 : i32
    scf.if %68 {
      %c0_36 = arith.constant 0 : index
      %c0_37 = arith.constant 0 : index
      %72 = vector.load %arg7[%c0_36, %c0_37] : memref<1x128xf32, #tpu.memory_space<vmem>>, vector<1x128xf32>
      %73 = vector.broadcast %72 : vector<1x128xf32> to vector<8x128xf32>
      %74 = arith.addf %65, %73 : vector<8x128xf32>
      %c0_38 = arith.constant 0 : index
      %c0_39 = arith.constant 0 : index
      %75 = vector.load %arg8[%c0_38, %c0_39] : memref<8x128xf32, #tpu.memory_space<vmem>>, vector<8x128xf32>
      tpu.vector_store %arg8[%c0_38, %c0_39], %74 {strides = array<i32>} : memref<8x128xf32, #tpu.memory_space<vmem>>, vector<8x128xf32>,
    } else {
    }
    %c0_i32_34 = arith.constant 0 : i32
    %69 = arith.cmpi ne, %arg1, %c0_i32_34 : i32
    %70 = arith.extui %69 : i1 to i32
    %c0_i32_35 = arith.constant 0 : i32
    %71 = arith.cmpi ne, %70, %c0_i32_35 : i32
    scf.if %71 {
      %c0_36 = arith.constant 0 : index
      %c0_37 = arith.constant 0 : index
      %72 = vector.load %arg8[%c0_36, %c0_37] : memref<8x128xf32, #tpu.memory_space<vmem>>, vector<8x128xf32>
      %73 = arith.addf %72, %65 : vector<8x128xf32>
      %c0_38 = arith.constant 0 : index
      %c0_39 = arith.constant 0 : index
      %74 = vector.load %arg8[%c0_38, %c0_39] : memref<8x128xf32, #tpu.memory_space<vmem>>, vector<8x128xf32>
      tpu.vector_store %arg8[%c0_38, %c0_39], %73 {strides = array<i32>} : memref<8x128xf32, #tpu.memory_space<vmem>>, vector<8x128xf32>,
    } else {
    }
    return
  }
  func.func @transform_0(%arg0: i32, %arg1: i32) -> (i32, i32) {
    %c0_i32 = arith.constant 0 : i32
    %c0_i32_0 = arith.constant 0 : i32
    %c0_i32_1 = arith.constant 0 : i32
    return %c0_i32, %c0_i32_0 : i32, i32
  }
  func.func @transform_1(%arg0: i32, %arg1: i32) -> (i32, i32) {
    %c0_i32 = arith.constant 0 : i32
    %c0_i32_0 = arith.constant 0 : i32
    return %c0_i32, %arg1 : i32, i32
  }
  func.func @transform_2(%arg0: i32, %arg1: i32) -> (i32, i32) {
    %c0_i32 = arith.constant 0 : i32
    %c0_i32_0 = arith.constant 0 : i32
    return %c0_i32, %arg1 : i32, i32
  }
  func.func @transform_3(%arg0: i32, %arg1: i32) -> (i32, i32) {
    %c0_i32 = arith.constant 0 : i32
    %c0_i32_0 = arith.constant 0 : i32
    return %c0_i32, %arg1 : i32, i32
  }
  func.func @transform_4(%arg0: i32, %arg1: i32) -> (i32, i32) {
    %c0_i32 = arith.constant 0 : i32
    return %arg1, %arg0 : i32, i32
  }
  func.func @transform_5(%arg0: i32, %arg1: i32) -> (i32, i32) {
    %c0_i32 = arith.constant 0 : i32
    %c0_i32_0 = arith.constant 0 : i32
    return %c0_i32, %arg0 : i32, i32
  }
  func.func @transform_6(%arg0: i32, %arg1: i32) -> (i32, i32) {
    %c0_i32 = arith.constant 0 : i32
    %c0_i32_0 = arith.constant 0 : i32
    return %c0_i32, %arg0 : i32, i32
  }
}

</mosaic_0001>

<bundles_post_ra>
// kernel: tpu_custom_call.1
= control target key start
LH: loop header
LB: loop body
LE: loop exit
PB: predicated region body
PF: predicated region fallthrough
CT: control target
= control target key end

     0   :  { %11 = vsyncpa [#allocation3], 0  ;;  %s844_s0 = inlined_call_operand.hbm [shape: bf16[8,32], index: 0, kind: input, shape index: {}]   ;;  %s845_s1 = inlined_call_operand.hbm [shape: bf16[32,256], index: 1, kind: input, shape index: {}]   ;;  %s846_s2 = inlined_call_operand.vmem [shape: f32[1,256], index: 2, kind: input, shape index: {}]   ;;  %s847_s3 = inlined_call_operand.vmem [shape: f32[1,256], index: 3, kind: input, shape index: {}]   ;;  %s848_s4 = inlined_call_operand.hbm [shape: bf16[256,128], index: 4, kind: input, shape index: {}]   ;;  %s849_s5 = inlined_call_operand.vmem [shape: f32[1,128], index: 5, kind: input, shape index: {}]   ;;  %s850_s6 = inlined_call_operand.hbm [shape: f32[8,128], index: 6, kind: output, shape index: {}]  }
   0x1   :  { %12 = vsyncpa [#allocation6], 0 }
   0x2   :  { %13 = vsyncpa [#allocation4], 0  ;;  %s730_s21 = smov [#allocation5]  }
   0x3   :  { %s29_s22 = sshll.u32 %s730_s21, 4  ;;  %s30_s22 = int_to_ptr.vmem [resolvable:$true] %s29_s22 }
   0x4   :  { %s652_s23 = scalar_lea.vmem %s30_s22, 512  ;;  %p657_p1 = scmp.lt.s32.totalorder %s30_s22, %s30_s22 }
   0x5   :  { %p653_p0 = scmp.ne.s32.totalorder %s30_s22, %s652_s23  ;;  %p658_p2 = scmp.lt.s32.totalorder %s652_s23, %s652_s23 }
   0x7   :  { %p659_p3 = por %p658_p2, %p657_p1 }
   0x9   :  { %p660_p4 = pnand %p659_p3, %p653_p0 }
   0xb   :  { %663 = shalt.err (!%p660_p4)
}
   0xc   :  { %s731_s24 = smov 128   ;;  %s732_s25 = smov 8  }
   0xd   :  { %35 = dma.hbm_to_vmem [thread:$0]  %s845_s1, 512, %s30_s22, [#allocation6], %s731_s24, %s731_s24, %s732_s25  }
   0xe   :  { %s733_s28 = smov [#allocation2]   ;;  %s734_s30 = smov [#allocation7]  }
   0xf   :  { %s20_s29 = sshll.u32 %s733_s28, 4  ;;  %s45_s7 = sshll.u32 %s734_s30, 4  ;;  %s21_s29 = int_to_ptr.vmem [resolvable:$true] %s20_s29  ;;  %s46_s7 = int_to_ptr.vmem [resolvable:$true] %s45_s7 }
  0x10   :  { %s672_s8 = scalar_lea.vmem %s21_s29, 64  ;;  %p677_p6 = scmp.lt.s32.totalorder %s21_s29, %s21_s29 }
  0x11   :  { %p673_p5 = scmp.ne.s32.totalorder %s21_s29, %s672_s8  ;;  %p678_p7 = scmp.lt.s32.totalorder %s672_s8, %s672_s8 }
  0x13   :  { %p679_p8 = por %p678_p7, %p677_p6 }
  0x15   :  { %p680_p9 = pnand %p679_p8, %p673_p5 }
  0x17   :  { %683 = shalt.err (!%p680_p9)
}
  0x18   :  { %23 = dma.hbm_to_vmem [thread:$0]  %s844_s0, 64, %s21_s29, [#allocation3]  }
  0x19   :  { %s692_s11 = scalar_lea.vmem %s46_s7, 2048  ;;  %p697_p11 = scmp.lt.s32.totalorder %s46_s7, %s46_s7 }
  0x1a   :  { %p693_p10 = scmp.ne.s32.totalorder %s46_s7, %s692_s11  ;;  %p698_p12 = scmp.lt.s32.totalorder %s692_s11, %s692_s11 }
  0x1c   :  { %p699_p13 = por %p698_p12, %p697_p11 }
  0x1e   :  { %p700_p0 = pnand %p699_p13, %p693_p10 }
  0x20   :  { %703 = shalt.err (!%p700_p0)
}
  0x21   :  { %s735_s1 = smov 64   ;;  %s736_s12 = smov 4  }
  0x22   :  { %51 = dma.hbm_to_vmem [thread:$0]  %s848_s4, 2048, %s46_s7, [#allocation6], %s735_s1, %s735_s1, %s736_s12  }
  0x23   :  { %724 = dma.done.wait [#allocation3], 64  }
  0x24   :  { %725 = vsyncadd [#allocation3], 4294967232 }
  0x25   :  { %726 = dma.done.wait [#allocation6], 2560  }
  0x26   :  { %727 = vsyncadd [#allocation6], 4294964736  ;;  %v737_v0 = vmov 0.0   ;;  %vm738_vm0 = vmmov 0   ;;  %vm81_vm1 = vcmask 261120   ;;  %v624_v6 = vld [vmem:[#allocation7 + $0x78] sm:$0xff]  }
  0x27   :  { %554 = vmatprep.subr.bf16.mxu0 %v737_v0  ;;  %562 = vmatprep.subr.bf16.mxu1 %v737_v0  ;;  %v620_v1 = vld [vmem:[#allocation5 + $0x10] ss:$8 sps:$4 sm:$0xff]   ;;  %v621_v2 = vld [vmem:[#allocation5 + $0x14] ss:$8 sps:$4 sm:$0xff]   ;;  %v622_v3 = vld [vmem:[#allocation5] ss:$8 sps:$4 sm:$0xff]  }
  0x28   :  { %558 = vmatprep.mubr.msk.bf16.mxu0 %vm738_vm0, %v737_v0  ;;  %566 = vmatprep.mubr.msk.bf16.mxu1 %vm738_vm0, %v737_v0  ;;  %v623_v4 = vld [vmem:[#allocation5 + $0x4] ss:$8 sps:$4 sm:$0xff]   ;;  %v64_v5 = vld [vmem:[#allocation2] sm:$0xf]  ;;  %v626_v8 = vld [vmem:[#allocation7 + $0x70] sm:$0xff]   ;;  %s739_s21 = smov [#allocation8]  }
  0x29   :  { %555 = vmatpush3.bf16.msra.mxu0 %v620_v1  ;;  %563 = vmatpush3.bf16.msra.mxu1 %v621_v2  ;;  %v625_v7 = vld [vmem:[#allocation7 + $0x38] sm:$0xff]   ;;  %v627_v9 = vld [vmem:[#allocation7 + $0x30] sm:$0xff]   ;;  %v628_v10 = vld [vmem:[#allocation7 + $0x68] sm:$0xff]   ;;  %s497_s22 = sshll.u32 %s739_s21, 4  ;;  %s498_s22 = int_to_ptr.vmem [resolvable:$true] %s497_s22 }
  0x2a   :  { %556 = vmatprep.subr.bf16.mxu0 %v737_v0  ;;  %564 = vmatprep.subr.bf16.mxu1 %v737_v0  ;;  %v629_v11 = vld [vmem:[#allocation7 + $0x28] sm:$0xff]   ;;  %v630_v12 = vld [vmem:[#allocation7 + $0x60] sm:$0xff]   ;;  %v632_v14 = vld [vmem:[#allocation7 + $0x58] sm:$0xff]   ;;  %s704_s23 = scalar_lea.vmem %s498_s22, 128  ;;  %p709_p2 = scmp.lt.s32.totalorder %s498_s22, %s498_s22 }
  0x2b   :  { %v631_v13 = vld [vmem:[#allocation7 + $0x20] sm:$0xff]   ;;  %v633_v15 = vld [vmem:[#allocation7 + $0x18] sm:$0xff]   ;;  %v634_v16 = vld [vmem:[#allocation7 + $0x50] sm:$0xff]   ;;  %p705_p1 = scmp.ne.s32.totalorder %s498_s22, %s704_s23  ;;  %p710_p3 = scmp.lt.s32.totalorder %s704_s23, %s704_s23 }
  0x2c   :  { %v635_v17 = vld [vmem:[#allocation7 + $0x10] sm:$0xff]   ;;  %v636_v18 = vld [vmem:[#allocation7 + $0x48] sm:$0xff]   ;;  %v638_v20 = vld [vmem:[#allocation7 + $0x40] sm:$0xff]  }
  0x2d   :  { %557 = vmatpush3.bf16.msra.mxu0 %v622_v3  ;;  %565 = vmatpush3.bf16.msra.mxu1 %v623_v4  ;;  %v637_v19 = vld [vmem:[#allocation7 + $0x8] sm:$0xff]   ;;  %v639_v21 = vld [vmem:[#allocation7] sm:$0xff]   ;;  %v151_v4 = vlaneseq  ;;  %p711_p4 = por %p710_p3, %p709_p2 }
  0x2e   :  { %570 = vmatprep.subr.bf16.mxu0 %v737_v0  ;;  %590 = vmatprep.subr.bf16.mxu1 %v737_v0 }
  0x2f   :  { %p712_p5 = pnand %p711_p4, %p705_p1 }
  0x30   :  { %559 = vmatmul.mubr.msk.bf16.vlgmr.msra.gmra.mxu0 %vm81_vm1, %v64_v5  ;;  %567 = vmatmul.mubr.msk.bf16.vlgmr.msra.gmra.mxu1 %vm81_vm1, %v64_v5  ;;  %v152_v5 = vshrl.u32 %v151_v4, 7 }
  0x31   :  { %586 = vmatprep.mubr.msk.bf16.mxu0 %vm738_vm0, %v737_v0  ;;  %606 = vmatprep.mubr.msk.bf16.mxu1 %vm738_vm0, %v737_v0 }
  0x32   :  { %571 = vmatpush3.bf16.msra.mxu0 %v624_v6  ;;  %591 = vmatpush3.bf16.msra.mxu1 %v625_v7  ;;  %v143_v6 = vld [vmem:[%s846_s2] sm:$0x1]  ;;  %v153_v7 = vsub.s32 0, %v152_v5 }
  0x33   :  { %572 = vmatprep.subr.bf16.mxu0 %v737_v0  ;;  %592 = vmatprep.subr.bf16.mxu1 %v737_v0 }
  0x36   :  { %573 = vmatpush3.bf16.msra.mxu0 %v626_v8  ;;  %593 = vmatpush3.bf16.msra.mxu1 %v627_v9  ;;  %v256_v8 = vld [vmem:[%s846_s2 + $0x1] sm:$0x1] }
  0x37   :  { %574 = vmatprep.subr.bf16.mxu0 %v737_v0  ;;  %594 = vmatprep.subr.bf16.mxu1 %v737_v0 }
  0x3a   :  { %575 = vmatpush3.bf16.msra.mxu0 %v628_v10  ;;  %595 = vmatpush3.bf16.msra.mxu1 %v629_v11 }
  0x3b   :  { %576 = vmatprep.subr.bf16.mxu0 %v737_v0  ;;  %596 = vmatprep.subr.bf16.mxu1 %v737_v0 }
  0x3e   :  { %577 = vmatpush3.bf16.msra.mxu0 %v630_v12  ;;  %597 = vmatpush3.bf16.msra.mxu1 %v631_v13  ;;  %v147_v12 = vld [vmem:[%s847_s3] sm:$0x1] }
  0x3f   :  { %578 = vmatprep.subr.bf16.mxu0 %v737_v0  ;;  %598 = vmatprep.subr.bf16.mxu1 %v737_v0 }
  0x42   :  { %579 = vmatpush3.bf16.msra.mxu0 %v632_v14  ;;  %599 = vmatpush3.bf16.msra.mxu1 %v633_v15 }
  0x43   :  { %580 = vmatprep.subr.bf16.mxu0 %v737_v0  ;;  %600 = vmatprep.subr.bf16.mxu1 %v737_v0 }
  0x46   :  { %581 = vmatpush3.bf16.msra.mxu0 %v634_v16  ;;  %601 = vmatpush3.bf16.msra.mxu1 %v635_v17  ;;  %v260_v16 = vld [vmem:[%s847_s3 + $0x1] sm:$0x1] }
  0x47   :  { %582 = vmatprep.subr.bf16.mxu0 %v737_v0  ;;  %602 = vmatprep.subr.bf16.mxu1 %v737_v0 }
  0x4a   :  { %583 = vmatpush3.bf16.msra.mxu0 %v636_v18  ;;  %603 = vmatpush3.bf16.msra.mxu1 %v637_v19 }
  0x4b   :  { %584 = vmatprep.subr.bf16.mxu0 %v737_v0  ;;  %604 = vmatprep.subr.bf16.mxu1 %v737_v0 }
  0x4e   :  { %585 = vmatpush3.bf16.msra.mxu0 %v638_v20  ;;  %605 = vmatpush3.bf16.msra.mxu1 %v639_v21 }
  0xf0   :  { %v812_v22 = vpop.f32.mrf.mxu0  ;;  %v817_v25 = vpop.f32.mrf.mxu1 }
  0xf1   :  { %v125_v23 = vrot.slane %v812_v22, 4  ;;  %v132_v24 = vmul.f32 %v812_v22, %v812_v22  ;;  %v238_v26 = vrot.slane %v817_v25, 4  ;;  %v245_v27 = vmul.f32 %v817_v25, %v817_v25 }
  0xf2   :  { %v560_v28 = vpop.f32.mrf.mxu0  ;;  %v568_v31 = vpop.f32.mrf.mxu1 }
  0xf3   :  { %v126_v29 = vadd.f32 %v125_v23, %v812_v22  ;;  %v133_v30 = vrot.slane %v132_v24, 4  ;;  %v239_v32 = vadd.f32 %v238_v26, %v817_v25  ;;  %v246_v33 = vrot.slane %v245_v27, 4 }
  0xf4   :  { %v122_v34 = vpop.f32.mrf.mxu0  ;;  %v235_v37 = vpop.f32.mrf.mxu1 }
  0xf5   :  { %v127_v35 = vrot.slane %v126_v29, 2  ;;  %v134_v36 = vadd.f32 %v133_v30, %v132_v24  ;;  %v240_v38 = vrot.slane %v239_v32, 2  ;;  %v247_v39 = vadd.f32 %v246_v33, %v245_v27 }
  0xf6   :  { %v561_v40 = vpop.f32.mrf.mxu0  ;;  %v569_v43 = vpop.f32.mrf.mxu1 }
  0xf7   :  { %v128_v41 = vadd.f32 %v127_v35, %v126_v29  ;;  %v135_v42 = vrot.slane %v134_v36, 2  ;;  %v241_v44 = vadd.f32 %v240_v38, %v239_v32  ;;  %v248_v45 = vrot.slane %v247_v39, 2  ;;  %v529_v35 = vld [vmem:[%s849_s5] ss:$0 sm:$0xff] }
  0xf9   :  { %v129_v46 = vrot.slane %v128_v41, 1  ;;  %v136_v47 = vadd.f32 %v135_v42, %v134_v36  ;;  %v242_v48 = vrot.slane %v241_v44, 1  ;;  %v249_v49 = vadd.f32 %v248_v45, %v247_v39 }
  0xfb   :  { %v130_v50 = vadd.f32 %v129_v46, %v128_v41  ;;  %v137_v51 = vrot.slane %v136_v47, 1  ;;  %v243_v52 = vadd.f32 %v242_v48, %v241_v44  ;;  %v250_v53 = vrot.slane %v249_v49, 1 }
  0xfd   :  { %v131_v54 = vmul.f32 0.125, %v130_v50  ;;  %v138_v55 = vadd.f32 %v137_v51, %v136_v47  ;;  %v244_v56 = vmul.f32 0.125, %v243_v52  ;;  %v251_v57 = vadd.f32 %v250_v53, %v249_v49 }
  0xff   :  { %v139_v58 = vmul.f32 0.125, %v138_v55  ;;  %v140_v59 = vmul.f32 %v131_v54, %v131_v54  ;;  %v252_v60 = vmul.f32 0.125, %v251_v57  ;;  %v253_v61 = vmul.f32 %v244_v56, %v244_v56 }
 0x101   :  { %v141_v62 = vsub.f32 %v139_v58, %v140_v59  ;;  %v254_v63 = vsub.f32 %v252_v60, %v253_v61 }
 0x103   :  { %v142_v0 = vmax.f32 %v141_v62, 0.0  ;;  %v255_v1 = vmax.f32 %v254_v63, 0.0 }
 0x105   :  { %v144_v2 = vadd.f32 1e-05, %v142_v0  ;;  %v257_v3 = vadd.f32 1e-05, %v255_v1 }
 0x107   :  { %640 = vrsqrt.f32 %v144_v2 }
 0x108   :  { %642 = vrsqrt.f32 %v257_v3 }
 0x114   :  { %v641_v9 = vpop.eup %640 }
 0x115   :  { %v643_v10 = vpop.eup %642  ;;  %v146_v11 = vmul.f32 %v641_v9, %v143_v6 }
 0x116   :  { %v259_v13 = vmul.f32 %v643_v10, %v256_v8 }
 0x117   :  { %v148_v14 = vmul.f32 %v146_v11, %v131_v54  ;;  %v154_v15 = vrot.slane %v146_v11, %v153_v7 }
 0x118   :  { %v261_v17 = vmul.f32 %v259_v13, %v244_v56  ;;  %v267_v18 = vrot.slane %v259_v13, %v153_v7 }
 0x119   :  { %v149_v19 = vsub.f32 %v147_v12, %v148_v14  ;;  %v156_v21 = vmul.f32 %v154_v15, %v812_v22 }
 0x11a   :  { %v262_v20 = vsub.f32 %v260_v16, %v261_v17  ;;  %v269_v24 = vmul.f32 %v267_v18, %v817_v25 }
 0x11b   :  { %v161_v23 = vrot.slane %v149_v19, %v153_v7 }
 0x11c   :  { %v274_v26 = vrot.slane %v262_v20, %v153_v7 }
 0x11d   :  { %v163_v27 = vadd.f32 %v161_v23, %v156_v21 }
 0x11e   :  { %v276_v28 = vadd.f32 %v274_v26, %v269_v24 }
 0x11f   :  { %v164_v29 = vmax.f32 %v163_v27, 0.0 }
 0x120   :  { %v277_v30 = vmax.f32 %v276_v28, 0.0 }
 0x121   :  { %v165_v31 = vpack.c.bf16 %v164_v29, %v164_v29 }
 0x122   :  { %v278_v32 = vpack.c.bf16 %v277_v30, %v277_v30 }
 0x123   :  { %607 = vmatmul.mubr.bf16.vlgmr.msra.gmra.mxu1 %v165_v31 }
 0x124   :  { %587 = vmatmul.mubr.bf16.vlgmr.msra.gmra.mxu0 %v278_v32 }
 0x1e3   :  { %v465_v33 = vpop.f32.mrf.mxu1 }
 0x1e4   :  { %v377_v34 = vpop.f32.mrf.mxu0 }
 0x1e5   :  { %v466_v22 = vadd.f32 %v465_v33, %v377_v34  ;;  %v608_v36 = vpop.f32.mrf.mxu1 }
 0x1e6   :  { %v588_v25 = vpop.f32.mrf.mxu0 }
 0x1e7   :  { %v482_v37 = vadd.f32 %v529_v35, %v466_v22  ;;  %v468_v38 = vpop.f32.mrf.mxu1 }
 0x1e8   :  { %v380_v39 = vpop.f32.mrf.mxu0 }
 0x1e9   :  { %483 = vst [vmem:[#allocation8] sm:$0xff] %v482_v37  ;;  %v609_v40 = vpop.f32.mrf.mxu1 }
 0x1ea   :  { %v589_v41 = vpop.f32.mrf.mxu0 }
 0x1eb   :  { %715 = shalt.err (!%p712_p5)
}
 0x1ec   :  { %500 = dma.vmem_to_hbm [thread:$0]  %s498_s22, 128, %s850_s6, [#allocation4]  }
 0x1ed   :  { %728 = dma.done.wait [#allocation4], 128  }
 0x1ee   :  { %729 = vsyncadd [#allocation4], 4294967168 }
 0x1ef   :  { %504 = vsyncpa [#allocation3], 1 }
 0x1f0   :  { %505 = vsyncpa [#allocation6], 1 }
 0x1f1   :  { %506 = vsyncpa [#allocation4], 1 }

</bundles_post_ra>
